<compile_context>
chip_gen: v6e
topology: v6e:2x2x1
jax: 0.10.0
libtpu: 0.0.40
codegen_flags: <defaults>
</compile_context>

<pallas_src>
import functools

import jax
import jax.numpy as jnp
from jax.experimental import pallas as pl
from jax.experimental.pallas import tpu as pltpu


def _round_up(x, m):
    return ((x + m - 1) // m) * m


def _pick_block_n(n, c, itemsize, vmem_budget_bytes=24 * 1024 * 1024):
    """Largest batch tile whose double-buffered inputs fit a VMEM budget.

    Budget stays well under v7x's 64 MiB physical VMEM (and the 16/32 MiB scoped
    defaults elsewhere). Lane padding of small C and of the (TN, 1) int32 target
    column is accounted for.
    """
    c_lanes = _round_up(max(c, 1), 128)
    per_row = 2 * (c_lanes * max(int(itemsize), 2) + 128 * 4)  # 2 = double buffering
    bn = vmem_budget_bytes // per_row
    bn = min(bn, 4096, _round_up(max(n, 1), 8))
    bn = max(8, (bn // 8) * 8)
    return int(bn)


def _focal_loss_kernel(logits_ref, tgt_ref, out_ref, acc_ref, *,
                       alpha, gamma, n_valid, block_n, reduction):
    i = pl.program_id(0)

    @pl.when(i == 0)
    def _():
        acc_ref[...] = jnp.zeros_like(acc_ref)

    # ---- per-sample cross entropy: ce = logsumexp(logits) - logits[target] ----
    logits = logits_ref[...].astype(jnp.float32)            # (TN, C)
    tgt = tgt_ref[...]                                       # (TN, 1) int32

    row_max = jnp.max(logits, axis=-1, keepdims=True)        # (TN, 1)
    shifted = logits - row_max
    sum_exp = jnp.sum(jnp.exp(shifted), axis=-1, keepdims=True)

    col_idx = jax.lax.broadcasted_iota(jnp.int32, logits.shape, 1)
    tgt_shift = jnp.sum(jnp.where(col_idx == tgt, shifted, 0.0),
                        axis=-1, keepdims=True)              # shifted target logit

    ce = jnp.log(sum_exp) - tgt_shift                        # (TN, 1), >= 0

    # ---- focal modulation: (1 - pt)^gamma * ce ----
    # clamp (1 - pt) at 0: ce can round to a tiny negative number.
    one_minus_pt = jnp.maximum(1.0 - jnp.exp(-ce), 0.0)
    g = float(gamma)
    if g == int(g) and 0 <= int(g) <= 8:
        # integer gamma (default gamma=2): cheap VPU multiplies, no pow/log NaNs.
        mod = jnp.ones_like(one_minus_pt)
        for _ in range(int(g)):
            mod = mod * one_minus_pt
    else:
        mod = jnp.power(one_minus_pt, jnp.float32(g))
    focal = mod * ce                                          # (TN, 1)

    # ---- mask padded tail rows ----
    row = jax.lax.broadcasted_iota(jnp.int32, (block_n, 1), 0) + i * block_n
    focal = jnp.where(row < n_valid, focal, 0.0)

    # vector accumulator: elementwise add each step, reduce once at the end.
    acc_ref[...] += focal

    @pl.when(i == pl.num_programs(0) - 1)
    def _():
        total = jnp.sum(acc_ref[...], axis=(0, 1), keepdims=True)  # (1, 1)
        total = total * jnp.float32(alpha)
        if reduction == "mean":
            total = total / jnp.float32(n_valid)
        out_ref[...] = total


def focal_loss(logits, targets, *, alpha=1.0, gamma=2.0, reduction="mean"):
    """Matches FocalLoss.forward(inputs, targets) from the PyTorch module.

    logits : (N, C) float (f32 or bf16 — upcast to f32 in-kernel)
    targets: (N,)   int class indices
    returns scalar f32 for reduction 'mean' / 'sum'.
    """
    if reduction not in ("mean", "sum"):
        # TODO(synk): reduction='none' (per-sample vector output) not wired here;
        # the module default is 'mean', which is what we reproduce.
        raise NotImplementedError("reduction must be 'mean' or 'sum'")

    n, c = logits.shape
    block_n = _pick_block_n(n, c, jnp.dtype(logits.dtype).itemsize)
    num_blocks = -(-n // block_n)
    n_pad = num_blocks * block_n

    tgt2d = targets.astype(jnp.int32).reshape(n, 1)
    if n_pad != n:
        logits = jnp.pad(logits, ((0, n_pad - n), (0, 0)))
        tgt2d = jnp.pad(tgt2d, ((0, n_pad - n), (0, 0)))

    kernel = functools.partial(
        _focal_loss_kernel,
        alpha=float(alpha), gamma=float(gamma),
        n_valid=n, block_n=block_n, reduction=reduction,
    )

    # Explicit scoped-VMEM limit: double-buffered inputs + accumulator + headroom,
    # capped below v7x's 64 MiB physical VMEM.
    c_lanes = _round_up(c, 128)
    itemsize = max(jnp.dtype(logits.dtype).itemsize, 2)
    vmem_limit = (2 * block_n * (c_lanes * itemsize + 128 * 4)   # 2x-buffered inputs
                  + block_n * 128 * 4                            # accumulator
                  + (4 << 20))                                   # headroom
    vmem_limit = int(min(max(vmem_limit, 8 << 20), 48 << 20))

    out = pl.pallas_call(
        kernel,
        out_shape=jax.ShapeDtypeStruct((1, 1), jnp.float32),
        grid_spec=pltpu.PrefetchScalarGridSpec(
            num_scalar_prefetch=0,
            grid=(num_blocks,),
            in_specs=[
                pl.BlockSpec((block_n, c), lambda i: (i, 0)),
                pl.BlockSpec((block_n, 1), lambda i: (i, 0)),
            ],
            out_specs=pl.BlockSpec((1, 1), lambda i: (0, 0)),
            scratch_shapes=[pltpu.VMEM((block_n, 1), jnp.float32)],
        ),
        compiler_params=pltpu.CompilerParams(
            # single reduction axis sharing one accumulator -> "arbitrary".
            # TODO(synk): for v7x megacore, split the batch over a leading
            # "parallel" grid axis emitting per-core partial sums and finish the
            # reduction in the wrapper.
            dimension_semantics=("arbitrary",),
            vmem_limit_bytes=vmem_limit,
        ),
    )(logits, tgt2d)
    return out[0, 0]


def focal_loss_ref(logits, targets, *, alpha=1.0, gamma=2.0, reduction="mean"):
    """Pure-JAX reference mirroring torch CrossEntropyLoss(reduction='none')."""
    logits = logits.astype(jnp.float32)
    lse = jax.nn.logsumexp(logits, axis=-1)
    tgt_logit = jnp.take_along_axis(logits, targets[:, None], axis=-1)[:, 0]
    ce = lse - tgt_logit
    pt = jnp.exp(-ce)
    fl = alpha * (1.0 - pt) ** gamma * ce
    return jnp.mean(fl) if reduction == "mean" else jnp.sum(fl)


if __name__ == "__main__":
    key = jax.random.PRNGKey(0)
    k1, k2, k3, k4 = jax.random.split(key, 4)

    # Case 1: small block-aligned batch over 32 classes (CNN classifier head).
    N1, C1 = 16, 32
    logits1 = jax.random.normal(k1, (N1, C1), dtype=jnp.float32) * 2.0
    targets1 = jax.random.randint(k2, (N1,), 0, C1, dtype=jnp.int32)
    out1 = jax.block_until_ready(focal_loss(logits1, targets1, alpha=1.0, gamma=2.0))
    ref1 = focal_loss_ref(logits1, targets1, alpha=1.0, gamma=2.0)
    assert jnp.allclose(out1, ref1, rtol=1e-5, atol=1e-5), (out1, ref1)

    # Case 2: ragged batch (exercises padding + tail-row masking) with 'sum'.
    N2, C2 = 50, 10
    logits2 = jax.random.normal(k3, (N2, C2), dtype=jnp.float32) * 3.0
    targets2 = jax.random.randint(k4, (N2,), 0, C2, dtype=jnp.int32)
    out2 = jax.block_until_ready(focal_loss(logits2, targets2, reduction="sum"))
    ref2 = focal_loss_ref(logits2, targets2, reduction="sum")
    assert jnp.allclose(out2, ref2, rtol=1e-5, atol=1e-4), (out2, ref2)

    print("KERNEL_OK")
</pallas_src>

<mosaic_0001>
module attributes {stable_mosaic.version = 11 : i64} {
  func.func @_focal_loss_kernel(%arg0: i32, %arg1: memref<16x32xf32, #tpu.memory_space<vmem>>, %arg2: memref<16x1xi32, #tpu.memory_space<vmem>>, %arg3: memref<1x1xf32, #tpu.memory_space<vmem>>, %arg4: memref<16x1xf32, #tpu.memory_space<vmem>>) attributes {dimension_semantics = [#tpu.dimension_semantics<arbitrary>], iteration_bounds = array<i64: 1>, scalar_prefetch = 0 : i64, scratch_operands = 1 : i64, tpu.core_type = #tpu.core_type<tc>, window_params = [{transform_indices = @transform_0, window_bounds = array<i64: 16, 32>}, {transform_indices = @transform_1, window_bounds = array<i64: 16, 1>}, {pipeline_mode = #tpu.pipeline_mode<synchronous>, transform_indices = @transform_2, window_bounds = array<i64: 1, 1>}]} {
    %c0_i32 = arith.constant 0 : i32
    %0 = arith.cmpi eq, %arg0, %c0_i32 : i32
    %1 = arith.extui %0 : i1 to i32
    %c0_i32_0 = arith.constant 0 : i32
    %2 = arith.cmpi ne, %1, %c0_i32_0 : i32
    scf.if %2 {
      %cst_19 = arith.constant 0.000000e+00 : f32
      %46 = vector.broadcast %cst_19 : f32 to vector<16x1xf32>
      %c0_20 = arith.constant 0 : index
      %c0_21 = arith.constant 0 : index
      %47 = vector.load %arg4[%c0_20, %c0_21] : memref<16x1xf32, #tpu.memory_space<vmem>>, vector<16x1xf32>
      tpu.vector_store %arg4[%c0_20, %c0_21], %46 {strides = array<i32>} : memref<16x1xf32, #tpu.memory_space<vmem>>, vector<16x1xf32>,
    } else {
    }
    %c0 = arith.constant 0 : index
    %c0_1 = arith.constant 0 : index
    %3 = vector.load %arg1[%c0, %c0_1] : memref<16x32xf32, #tpu.memory_space<vmem>>, vector<16x32xf32>
    %c0_2 = arith.constant 0 : index
    %c0_3 = arith.constant 0 : index
    %4 = vector.load %arg2[%c0_2, %c0_3] : memref<16x1xi32, #tpu.memory_space<vmem>>, vector<16x1xi32>
    %cst = arith.constant dense<0xFF800000> : vector<16xf32>
    %5 = vector.multi_reduction <maximumf>, %3, %cst [1] : vector<16x32xf32> to vector<16xf32>
    %6 = vector.shape_cast %5 : vector<16xf32> to vector<16x1xf32>
    %7 = vector.broadcast %6 : vector<16x1xf32> to vector<16x32xf32>
    %8 = arith.subf %3, %7 : vector<16x32xf32>
    %9 = math.exp %8 : vector<16x32xf32>
    %cst_4 = arith.constant dense<0.000000e+00> : vector<16xf32>
    %10 = vector.multi_reduction <add>, %9, %cst_4 [1] : vector<16x32xf32> to vector<16xf32>
    %11 = vector.shape_cast %10 : vector<16xf32> to vector<16x1xf32>
    %12 = tpu.iota {dimensions = array<i32: 1>} : vector<16x32xi32>
    %13 = vector.broadcast %4 : vector<16x1xi32> to vector<16x32xi32>
    %14 = arith.cmpi eq, %12, %13 : vector<16x32xi32>
    %cst_5 = arith.constant 0.000000e+00 : f32
    %15 = vector.broadcast %cst_5 : f32 to vector<16x32xf32>
    %16 = arith.select %14, %8, %15 : vector<16x32xi1>, vector<16x32xf32>
    %cst_6 = arith.constant dense<0.000000e+00> : vector<16xf32>
    %17 = vector.multi_reduction <add>, %16, %cst_6 [1] : vector<16x32xf32> to vector<16xf32>
    %18 = vector.shape_cast %17 : vector<16xf32> to vector<16x1xf32>
    %19 = math.log %11 : vector<16x1xf32>
    %20 = arith.subf %19, %18 : vector<16x1xf32>
    %cst_7 = arith.constant 0.000000e+00 : f32
    %21 = vector.broadcast %cst_7 : f32 to vector<16x1xf32>
    %22 = arith.subf %21, %20 : vector<16x1xf32>
    %23 = math.exp %22 : vector<16x1xf32>
    %cst_8 = arith.constant 1.000000e+00 : f32
    %24 = vector.broadcast %cst_8 : f32 to vector<16x1xf32>
    %25 = arith.subf %24, %23 : vector<16x1xf32>
    %cst_9 = arith.constant 0.000000e+00 : f32
    %26 = vector.broadcast %cst_9 : f32 to vector<16x1xf32>
    %27 = arith.maximumf %25, %26 : vector<16x1xf32>
    %cst_10 = arith.constant 1.000000e+00 : f32
    %28 = vector.broadcast %cst_10 : f32 to vector<16x1xf32>
    %29 = arith.mulf %28, %27 : vector<16x1xf32>
    %30 = arith.mulf %29, %27 : vector<16x1xf32>
    %31 = arith.mulf %30, %20 : vector<16x1xf32>
    %32 = tpu.iota {dimensions = array<i32: 0>} : vector<16x1xi32>
    %c16_i32 = arith.constant 16 : i32
    %33 = arith.muli %arg0, %c16_i32 : i32
    %34 = vector.broadcast %33 : i32 to vector<16x1xi32>
    %35 = arith.addi %32, %34 : vector<16x1xi32>
    %c16_i32_11 = arith.constant 16 : i32
    %36 = vector.broadcast %c16_i32_11 : i32 to vector<16x1xi32>
    %37 = arith.cmpi slt, %35, %36 : vector<16x1xi32>
    %cst_12 = arith.constant 0.000000e+00 : f32
    %38 = vector.broadcast %cst_12 : f32 to vector<16x1xf32>
    %39 = arith.select %37, %31, %38 : vector<16x1xi1>, vector<16x1xf32>
    %c0_13 = arith.constant 0 : index
    %c0_14 = arith.constant 0 : index
    %40 = vector.load %arg4[%c0_13, %c0_14] : memref<16x1xf32, #tpu.memory_space<vmem>>, vector<16x1xf32>
    %41 = arith.addf %40, %39 : vector<16x1xf32>
    %c0_15 = arith.constant 0 : index
    %c0_16 = arith.constant 0 : index
    %42 = vector.load %arg4[%c0_15, %c0_16] : memref<16x1xf32, #tpu.memory_space<vmem>>, vector<16x1xf32>
    tpu.vector_store %arg4[%c0_15, %c0_16], %41 {strides = array<i32>} : memref<16x1xf32, #tpu.memory_space<vmem>>, vector<16x1xf32>,
    %c0_i32_17 = arith.constant 0 : i32
    %43 = arith.cmpi eq, %arg0, %c0_i32_17 : i32
    %44 = arith.extui %43 : i1 to i32
    %c0_i32_18 = arith.constant 0 : i32
    %45 = arith.cmpi ne, %44, %c0_i32_18 : i32
    scf.if %45 {
      %c0_19 = arith.constant 0 : index
      %c0_20 = arith.constant 0 : index
      %46 = vector.load %arg4[%c0_19, %c0_20] : memref<16x1xf32, #tpu.memory_space<vmem>>, vector<16x1xf32>
      %47 = vector.shape_cast %46 : vector<16x1xf32> to vector<1x16x1xf32>
      %cst_21 = arith.constant dense<0.000000e+00> : vector<1xf32>
      %48 = vector.multi_reduction <add>, %47, %cst_21 [1, 2] : vector<1x16x1xf32> to vector<1xf32>
      %49 = vector.shape_cast %48 : vector<1xf32> to vector<1x1x1xf32>
      %50 = vector.extract %49[0, 0, 0] : f32 from vector<1x1x1xf32>
      %51 = vector.broadcast %50 : f32 to vector<1x1xf32>
      %cst_22 = arith.constant 1.000000e+00 : f32
      %52 = vector.broadcast %cst_22 : f32 to vector<1x1xf32>
      %53 = arith.mulf %51, %52 : vector<1x1xf32>
      %cst_23 = arith.constant 1.600000e+01 : f32
      %54 = vector.broadcast %cst_23 : f32 to vector<1x1xf32>
      %55 = arith.divf %53, %54 : vector<1x1xf32>
      %c0_24 = arith.constant 0 : index
      %c0_25 = arith.constant 0 : index
      %56 = vector.load %arg3[%c0_24, %c0_25] : memref<1x1xf32, #tpu.memory_space<vmem>>, vector<1x1xf32>
      tpu.vector_store %arg3[%c0_24, %c0_25], %55 {strides = array<i32>} : memref<1x1xf32, #tpu.memory_space<vmem>>, vector<1x1xf32>,
    } else {
    }
    return
  }
  func.func @transform_0(%arg0: i32) -> (i32, i32) {
    %c0_i32 = arith.constant 0 : i32
    %c0_i32_0 = arith.constant 0 : i32
    return %arg0, %c0_i32 : i32, i32
  }
  func.func @transform_1(%arg0: i32) -> (i32, i32) {
    %c0_i32 = arith.constant 0 : i32
    %c0_i32_0 = arith.constant 0 : i32
    return %arg0, %c0_i32 : i32, i32
  }
  func.func @transform_2(%arg0: i32) -> (i32, i32) {
    %c0_i32 = arith.constant 0 : i32
    %c0_i32_0 = arith.constant 0 : i32
    %c0_i32_1 = arith.constant 0 : i32
    return %c0_i32, %c0_i32_0 : i32, i32
  }
}

</mosaic_0001>

<bundles_post_ra>
// kernel: tpu_custom_call.1
= control target key start
LH: loop header
LB: loop body
LE: loop exit
PB: predicated region body
PF: predicated region fallthrough
CT: control target
= control target key end

     0   :  { %vm23_vm0 = vcmask 261120   ;;  %v175_v4 = vmov 0   ;;  %s220_s0 = inlined_call_operand.vmem [shape: f32[16,32], index: 0, kind: input, shape index: {}]   ;;  %s221_s1 = inlined_call_operand.vmem [shape: s32[16,1], index: 1, kind: input, shape index: {}]   ;;  %s222_s2 = inlined_call_operand.hbm [shape: f32[1,1], index: 2, kind: output, shape index: {}]  }
   0x1   :  { %v19_v0 = vld [vmem:[%s220_s0] sm:$0xff]  ;;  %v20_v1 = vld [vmem:[%s220_s0 + $0x8] sm:$0xff]  ;;  %139 = vset.pattern.permute.xlu1 %v175_v4  ;;  %140 = vset.pattern.permute.xlu0 %v175_v4 }
   0x2   :  { %v21_v2 = vld [vmem:[%s221_s1] sm:$0xff]  ;;  %v24_v3 = vsel %vm23_vm0, %v19_v0, -inf }
   0x3   :  { %7 = vsyncpa [#allocation4], 0  ;;  %25 = vmax.xlane.f32.xlu0 %v24_v3  ;;  %45 = vperm.xlu1 %139, %v21_v2   ;;  %v27_v5 = vsel %vm23_vm0, %v20_v1, -inf  ;;  %v22_v6 = vld [vmem:[%s221_s1 + $0x8] sm:$0xff]  ;;  %v42_v13 = vlaneseq  ;;  %vm16_vm3 = vcmask 7168   ;;  %v176_v25 = vmov 0.0  }
   0x4   :  { %17 = vst.msk [vmem:[#allocation2] sm:$0xff] %vm16_vm3, %v176_v25  ;;  %18 = vst.msk [vmem:[#allocation2 + $0x8] sm:$0xff] %vm16_vm3, %v176_v25  ;;  %s177_s0 = smov [#allocation3]   ;;  %vm118_vm4 = vcmask 0  }
   0x5   :  { %v43_v15 = vand.u32 127, %v42_v13  ;;  %s126_s1 = sshll.u32 %s177_s0, 4  ;;  %s127_s1 = int_to_ptr.vmem [resolvable:$true] %s126_s1 }
   0x6   :  { %s153_s18 = scalar_lea.vmem %s127_s1, 16  ;;  %s157_s19 = scalar_lea.vmem %s127_s1, 32 }
   0x7   :  { %28 = vmax.xlane.f32.xlu0 %v27_v5  ;;  %48 = vperm.xlu1 %139, %v22_v6   ;;  %p154_p0 = scmp.ne.s32.totalorder %s127_s1, %s153_s18  ;;  %p158_p1 = scmp.lt.s32.totalorder %s127_s1, %s127_s1 }
   0x8   :  { %p159_p2 = scmp.lt.s32.totalorder %s157_s19, %s153_s18 }
   0xa   :  { %p160_p3 = por %p159_p2, %p158_p1 }
   0xb   :  { %v91_v46 = vld [vmem:[#allocation2] sm:$0xff]  ;;  %v92_v51 = vld [vmem:[#allocation2 + $0x8] sm:$0xff] }
   0xc   :  { %p161_p4 = pnand %p160_p3, %p154_p0 }
  0x7e   :  { %v46_v14 = vpop.permute.xlu1 %45 }
  0x7f   :  { %vm50_vm1 = vcmp.eq.s32.totalorder %v43_v15, %v46_v14 }
  0x82   :  { %v49_v17 = vpop.permute.xlu1 %48 }
  0x83   :  { %vm51_vm2 = vcmp.eq.s32.totalorder %v43_v15, %v49_v17 }
  0x8c   :  { %v26_v7 = vpop.xlane.xlu0 %25 }
  0x8d   :  { %v30_v8 = vsub.f32 %v19_v0, %v26_v7 }
  0x8f   :  { %v32_v9 = vmul.f32 1.442695, %v30_v8  ;;  %v52_v19 = vsel %vm50_vm1, %v30_v8, 0.0 }
  0x90   :  { %v29_v10 = vpop.xlane.xlu0 %28  ;;  %v54_v21 = vsel %vm23_vm0, %v52_v19, 0.0 }
  0x91   :  { %141 = vpow2.f32 %v32_v9  ;;  %v31_v11 = vsub.f32 %v20_v1, %v29_v10 }
  0x93   :  { %v34_v12 = vmul.f32 1.442695, %v31_v11  ;;  %v53_v23 = vsel %vm51_vm2, %v31_v11, 0.0 }
  0x94   :  { %v57_v24 = vsel %vm23_vm0, %v53_v23, 0.0 }
  0x95   :  { %143 = vpow2.f32 %v34_v12 }
  0x9e   :  { %v142_v16 = vpop.eup %141 }
  0x9f   :  { %v36_v18 = vsel %vm23_vm0, %v142_v16, 0.0 }
  0xa0   :  { %37 = vadd.xlane.f32.xlu0 %v36_v18 }
  0xa2   :  { %v144_v20 = vpop.eup %143 }
  0xa3   :  { %v39_v22 = vsel %vm23_vm0, %v144_v20, 0.0 }
  0xa4   :  { %55 = vadd.xlane.f32.xlu0 %v54_v21  ;;  %40 = vadd.xlane.f32.xlu1 %v39_v22 }
  0xa8   :  { %58 = vadd.xlane.f32.xlu0 %v57_v24 }
 0x129   :  { %v38_v26 = vpop.xlane.xlu0 %37 }
 0x12a   :  { %145 = vlog2.f32 %v38_v26 }
 0x12d   :  { %v41_v27 = vpop.xlane.xlu1 %40  ;;  %v56_v29 = vpop.xlane.xlu0 %55 }
 0x12e   :  { %147 = vlog2.f32 %v41_v27 }
 0x131   :  { %v59_v35 = vpop.xlane.xlu0 %58 }
 0x137   :  { %v146_v28 = vpop.eup %145 }
 0x138   :  { %v61_v30 = vmul.f32 0.6931472, %v146_v28 }
 0x13a   :  { %v64_v31 = vsub.f32 %v61_v30, %v56_v29 }
 0x13b   :  { %v148_v32 = vpop.eup %147 }
 0x13c   :  { %v66_v33 = vsub.f32 0.0, %v64_v31  ;;  %v63_v34 = vmul.f32 0.6931472, %v148_v32 }
 0x13e   :  { %v68_v36 = vmul.f32 1.442695, %v66_v33  ;;  %v65_v37 = vsub.f32 %v63_v34, %v59_v35 }
 0x140   :  { %149 = vpow2.f32 %v68_v36  ;;  %v67_v38 = vsub.f32 0.0, %v65_v37 }
 0x142   :  { %v70_v39 = vmul.f32 1.442695, %v67_v38 }
 0x144   :  { %151 = vpow2.f32 %v70_v39 }
 0x14d   :  { %v150_v40 = vpop.eup %149 }
 0x14e   :  { %v72_v41 = vsub.f32 1.0, %v150_v40 }
 0x150   :  { %v74_v42 = vmax.f32 %v72_v41, 0.0 }
 0x151   :  { %v152_v43 = vpop.eup %151 }
 0x152   :  { %v76_v44 = vmul.f32 %v74_v42, %v74_v42  ;;  %v73_v45 = vsub.f32 1.0, %v152_v43 }
 0x154   :  { %v78_v47 = vmul.f32 %v76_v44, %v64_v31  ;;  %v75_v48 = vmax.f32 %v73_v45, 0.0 }
 0x156   :  { %v93_v49 = vadd.f32 %v91_v46, %v78_v47  ;;  %v77_v50 = vmul.f32 %v75_v48, %v75_v48 }
 0x158   :  { %96 = vst.msk [vmem:[#allocation2] sm:$0xff] %vm16_vm3, %v93_v49  ;;  %v79_v52 = vmul.f32 %v77_v50, %v65_v37 }
 0x15a   :  { %v94_v53 = vadd.f32 %v92_v51, %v79_v52 }
 0x15c   :  { %97 = vst.msk [vmem:[#allocation2 + $0x8] sm:$0xff] %vm16_vm3, %v94_v53 }
 0x15f   :  { %v101_v54 = vld [vmem:[#allocation2] sm:$0xff] }
 0x160   :  { %v103_v56 = vsel %vm16_vm3, %v101_v54, 0.0 }
 0x163   :  { %v102_v55 = vld [vmem:[#allocation2 + $0x8] sm:$0xff] }
 0x164   :  { %v104_v57 = vsel %vm16_vm3, %v102_v55, 0.0 }
 0x165   :  { %v105_v58 = vadd.f32 %v104_v57, %v103_v56 }
 0x167   :  { %106 = vadd.xlane.f32.xlu0 %v105_v58 }
 0x1f0   :  { %v107_v59 = vpop.xlane.xlu0 %106 }
 0x1f1   :  { %v108_v60 = vrot.slane %v107_v59, 4 }
 0x1f3   :  { %v109_v61 = vadd.f32 %v108_v60, %v107_v59 }
 0x1f5   :  { %v110_v62 = vrot.slane %v109_v61, 2 }
 0x1f7   :  { %v111_v63 = vadd.f32 %v110_v62, %v109_v61 }
 0x1f9   :  { %v112_v0 = vrot.slane %v111_v63, 1 }
 0x1fb   :  { %v113_v1 = vadd.f32 %v112_v0, %v111_v63 }
 0x1fd   :  { %134 = vpush %v113_v1 }
 0x22e   :  { %s135_s17 = spop %134 }
 0x22f   :  { %v115_v2 = vstv %s135_s17 }
 0x230   :  { %v117_v3 = vmul.f32 0.0625, %v115_v2 }
 0x232   :  { %119 = vst.msk [vmem:[#allocation3] sm:$0x1] %vm118_vm4, %v117_v3 }
 0x233   :  { %164 = shalt.err (!%p161_p4)
}
 0x234   :  { %129 = dma.vmem_to_hbm [thread:$0]  %s127_s1, 16, %s222_s2, [#allocation4]  }
 0x235   :  { %173 = dma.done.wait [#allocation4], 16  }
 0x236   :  { %174 = vsyncadd [#allocation4], 4294967280 }
 0x237   :  { %133 = vsyncpa [#allocation4], 1 }

</bundles_post_ra>
